<compile_context>
chip_gen: v7x
topology: tpu7x:2x2x1
jax: 0.10.0
libtpu: 0.0.40
codegen_flags: <defaults>
</compile_context>

<pallas_src>
from functools import partial

import jax
import jax.numpy as jnp
from jax.experimental import pallas as pl
from jax.experimental.pallas import tpu as pltpu


def _leaky_relu(x, slope=0.2):
    return jnp.where(x > 0, x, slope * x)


# --------------------------------------------------------------------------- #
# Kernel 1: conv1 (3x3, C -> C/4) -> LeakyReLU -> conv2 (1x1, C/4 -> C/4) -> LeakyReLU
#   p_ref : (1, TL, 9*C)  bf16 im2col patches of x
#   z_ref : (1, TL, C/4)  bf16 intermediate activations
# --------------------------------------------------------------------------- #
def _conv12_kernel(p_ref, w1_ref, b1_ref, w2_ref, b2_ref, z_ref):
    p = p_ref[0]                                                   # (TL, 9*C) bf16
    y = jnp.dot(p, w1_ref[...], preferred_element_type=jnp.float32) + b1_ref[...]
    y = _leaky_relu(y)
    y = jnp.dot(y.astype(jnp.bfloat16), w2_ref[...],
                preferred_element_type=jnp.float32) + b2_ref[...]
    y = _leaky_relu(y)
    z_ref[0] = y.astype(z_ref.dtype)


# --------------------------------------------------------------------------- #
# Kernel 2: conv3 (3x3, C/4 -> C) + bias + residual add with x
#   p_ref : (1, TL, 9*C/4) bf16 im2col patches of the intermediate
#   x_ref : (1, TL, C)     f32 original tokens (residual)
# --------------------------------------------------------------------------- #
def _conv3_res_kernel(p_ref, x_ref, w3_ref, b3_ref, o_ref):
    p = p_ref[0]                                                   # (TL, 9*C4) bf16
    y = jnp.dot(p, w3_ref[...], preferred_element_type=jnp.float32) + b3_ref[...]
    o_ref[0] = (y + x_ref[0].astype(jnp.float32)).astype(o_ref.dtype)


# --------------------------------------------------------------------------- #
# Wrapper-side helpers (XLA, not Pallas)
# --------------------------------------------------------------------------- #
def _im2col_3x3(img):
    """(B, H, W, Cin) -> (B, H*W, 9*Cin) with zero ('same') padding."""
    B, H, W, Cin = img.shape
    pad = jnp.pad(img, ((0, 0), (1, 1), (1, 1), (0, 0)))
    taps = [pad[:, dh:dh + H, dw:dw + W, :] for dh in range(3) for dw in range(3)]
    return jnp.concatenate(taps, axis=-1).reshape(B, H * W, 9 * Cin)


def _pick_token_tile(L, max_tile=512):
    """Largest divisor of L that is a multiple of 8 and <= max_tile; else L."""
    t = min(L, max_tile)
    t -= t % 8
    while t >= 8:
        if L % t == 0:
            return t
        t -= 8
    return L


def rstb_forward(x, params, x_size):
    """x: (B, H*W, C) float32 tokens; params: '3conv' weights; x_size: (H, W)."""
    B, L, C = x.shape
    H, W = x_size
    assert L == H * W and C % 4 == 0
    C4 = C // 4
    w1, b1, w2, b2, w3, b3 = params

    # Flatten conv weights for the im2col matmuls; bf16 MXU operands, f32 biases.
    w1r = w1.reshape(9 * C, C4).astype(jnp.bfloat16)    # (9C, C/4)
    w2b = w2.astype(jnp.bfloat16)                       # (C/4, C/4)
    w3r = w3.reshape(9 * C4, C).astype(jnp.bfloat16)    # (9C/4, C)
    b1f = b1.astype(jnp.float32)
    b2f = b2.astype(jnp.float32)
    b3f = b3.astype(jnp.float32)

    TL = _pick_token_tile(L)
    grid = (B, L // TL)
    cparams = pltpu.CompilerParams(
        dimension_semantics=("parallel", "parallel"),
        vmem_limit_bytes=32 * 1024 * 1024,
    )

    def tok_spec(last):
        return pl.BlockSpec((1, TL, last), lambda b, t: (b, t, 0))

    def full_spec(shape):
        return pl.BlockSpec(shape, lambda b, t: (0,) * len(shape))

    # residual_group treated as identity (see TODO above): conv1 consumes x directly.
    x_img = x.reshape(B, H, W, C)
    p1 = _im2col_3x3(x_img).astype(jnp.bfloat16)         # (B, L, 9*C)

    z = pl.pallas_call(
        _conv12_kernel,
        out_shape=jax.ShapeDtypeStruct((B, L, C4), jnp.bfloat16),
        grid=grid,
        in_specs=[tok_spec(9 * C),
                  full_spec(w1r.shape), full_spec(b1f.shape),
                  full_spec(w2b.shape), full_spec(b2f.shape)],
        out_specs=tok_spec(C4),
        compiler_params=cparams,
    )(p1, w1r, b1f, w2b, b2f)

    p3 = _im2col_3x3(z.reshape(B, H, W, C4))             # (B, L, 9*C/4) bf16

    out = pl.pallas_call(
        _conv3_res_kernel,
        out_shape=jax.ShapeDtypeStruct((B, L, C), x.dtype),
        grid=grid,
        in_specs=[tok_spec(9 * C4), tok_spec(C),
                  full_spec(w3r.shape), full_spec(b3f.shape)],
        out_specs=tok_spec(C),
        compiler_params=cparams,
    )(p3, x, w3r, b3f)
    return out


def init_params(key, dim):
    """Deterministic init of the '3conv' branch parameters.

    3x3 convs as (kh, kw, cin, cout); 1x1 conv as (cin, cout); biases as (1, cout).
    """
    c4 = dim // 4
    k1, k2, k3 = jax.random.split(key, 3)
    scale = 0.1
    w1 = scale * jax.random.normal(k1, (3, 3, dim, c4), jnp.float32)
    b1 = jnp.zeros((1, c4), jnp.float32)
    w2 = scale * jax.random.normal(k2, (c4, c4), jnp.float32)
    b2 = jnp.zeros((1, c4), jnp.float32)
    w3 = scale * jax.random.normal(k3, (3, 3, c4, dim), jnp.float32)
    b3 = jnp.zeros((1, dim), jnp.float32)
    return (w1, b1, w2, b2, w3, b3)


if __name__ == "__main__":
    key = jax.random.PRNGKey(0)
    kx, kp = jax.random.split(key)

    B, H, W, dim = 2, 16, 16, 32          # small synthetic shapes
    x = jax.random.normal(kx, (B, H * W, dim), jnp.float32)   # (B, L, C) tokens
    params = init_params(kp, dim)

    out = rstb_forward(x, params, (H, W))
    out = jax.block_until_ready(out)
    assert out.shape == (B, H * W, dim) and out.dtype == jnp.float32
    print("KERNEL_OK")
</pallas_src>

<mosaic_0001>
module attributes {stable_mosaic.version = 11 : i64} {
  func.func @_conv12_kernel(%arg0: i32, %arg1: i32, %arg2: memref<1x256x288xbf16, #tpu.memory_space<vmem>>, %arg3: memref<288x8xbf16, #tpu.memory_space<vmem>>, %arg4: memref<1x8xf32, #tpu.memory_space<vmem>>, %arg5: memref<8x8xbf16, #tpu.memory_space<vmem>>, %arg6: memref<1x8xf32, #tpu.memory_space<vmem>>, %arg7: memref<1x256x8xbf16, #tpu.memory_space<vmem>>) attributes {dimension_semantics = [#tpu.dimension_semantics<parallel>, #tpu.dimension_semantics<parallel>], iteration_bounds = array<i64: 2, 1>, scalar_prefetch = 0 : i64, scratch_operands = 0 : i64, tpu.core_type = #tpu.core_type<tc>, window_params = [{transform_indices = @transform_0, window_bounds = array<i64: 1, 256, 288>}, {pipeline_mode = #tpu.pipeline_mode<synchronous>, transform_indices = @transform_1, window_bounds = array<i64: 288, 8>}, {pipeline_mode = #tpu.pipeline_mode<synchronous>, transform_indices = @transform_2, window_bounds = array<i64: 1, 8>}, {pipeline_mode = #tpu.pipeline_mode<synchronous>, transform_indices = @transform_3, window_bounds = array<i64: 8, 8>}, {pipeline_mode = #tpu.pipeline_mode<synchronous>, transform_indices = @transform_4, window_bounds = array<i64: 1, 8>}, {transform_indices = @transform_5, window_bounds = array<i64: 1, 256, 8>}]} {
    %c0 = arith.constant 0 : index
    %c0_0 = arith.constant 0 : index
    %c0_1 = arith.constant 0 : index
    %0 = vector.load %arg2[%c0, %c0_0, %c0_1] : memref<1x256x288xbf16, #tpu.memory_space<vmem>>, vector<1x256x288xbf16>
    %1 = vector.shape_cast %0 : vector<1x256x288xbf16> to vector<256x288xbf16>
    %c0_2 = arith.constant 0 : index
    %c0_3 = arith.constant 0 : index
    %2 = vector.load %arg3[%c0_2, %c0_3] : memref<288x8xbf16, #tpu.memory_space<vmem>>, vector<288x8xbf16>
    %cst = arith.constant dense<0.000000e+00> : vector<256x8xf32>
    %3 = tpu.matmul %1, %2, %cst {dimension_numbers = #tpu.dot_dimension_numbers<[1], [0], [0], [1], [0, 0, 1, 1], [], []>} : vector<256x288xbf16>, vector<288x8xbf16>, vector<256x8xf32> -> vector<256x8xf32>
    %c0_4 = arith.constant 0 : index
    %c0_5 = arith.constant 0 : index
    %4 = vector.load %arg4[%c0_4, %c0_5] : memref<1x8xf32, #tpu.memory_space<vmem>>, vector<1x8xf32>
    %5 = vector.broadcast %4 : vector<1x8xf32> to vector<256x8xf32>
    %6 = arith.addf %3, %5 : vector<256x8xf32>
    %cst_6 = arith.constant 0.000000e+00 : f32
    %7 = vector.broadcast %cst_6 : f32 to vector<256x8xf32>
    %8 = arith.cmpf ogt, %6, %7 : vector<256x8xf32>
    %cst_7 = arith.constant 2.000000e-01 : f32
    %9 = vector.broadcast %cst_7 : f32 to vector<256x8xf32>
    %10 = arith.mulf %9, %6 : vector<256x8xf32>
    %11 = arith.select %8, %6, %10 : vector<256x8xi1>, vector<256x8xf32>
    %12 = arith.truncf %11 : vector<256x8xf32> to vector<256x8xbf16>
    %c0_8 = arith.constant 0 : index
    %c0_9 = arith.constant 0 : index
    %13 = vector.load %arg5[%c0_8, %c0_9] : memref<8x8xbf16, #tpu.memory_space<vmem>>, vector<8x8xbf16>
    %cst_10 = arith.constant dense<0.000000e+00> : vector<256x8xf32>
    %14 = tpu.matmul %12, %13, %cst_10 {dimension_numbers = #tpu.dot_dimension_numbers<[1], [0], [0], [1], [0, 0, 1, 1], [], []>} : vector<256x8xbf16>, vector<8x8xbf16>, vector<256x8xf32> -> vector<256x8xf32>
    %c0_11 = arith.constant 0 : index
    %c0_12 = arith.constant 0 : index
    %15 = vector.load %arg6[%c0_11, %c0_12] : memref<1x8xf32, #tpu.memory_space<vmem>>, vector<1x8xf32>
    %16 = vector.broadcast %15 : vector<1x8xf32> to vector<256x8xf32>
    %17 = arith.addf %14, %16 : vector<256x8xf32>
    %cst_13 = arith.constant 0.000000e+00 : f32
    %18 = vector.broadcast %cst_13 : f32 to vector<256x8xf32>
    %19 = arith.cmpf ogt, %17, %18 : vector<256x8xf32>
    %cst_14 = arith.constant 2.000000e-01 : f32
    %20 = vector.broadcast %cst_14 : f32 to vector<256x8xf32>
    %21 = arith.mulf %20, %17 : vector<256x8xf32>
    %22 = arith.select %19, %17, %21 : vector<256x8xi1>, vector<256x8xf32>
    %23 = arith.truncf %22 : vector<256x8xf32> to vector<256x8xbf16>
    %c0_15 = arith.constant 0 : index
    %c0_16 = arith.constant 0 : index
    %c0_17 = arith.constant 0 : index
    %24 = vector.load %arg7[%c0_15, %c0_16, %c0_17] : memref<1x256x8xbf16, #tpu.memory_space<vmem>>, vector<1x256x8xbf16>
    %25 = vector.shape_cast %24 : vector<1x256x8xbf16> to vector<256x8xbf16>
    %26 = vector.shape_cast %23 : vector<256x8xbf16> to vector<1x256x8xbf16>
    tpu.vector_store %arg7[%c0_15, %c0_16, %c0_17], %26 {strides = array<i32>} : memref<1x256x8xbf16, #tpu.memory_space<vmem>>, vector<1x256x8xbf16>,
    return
  }
  func.func @transform_0(%arg0: i32, %arg1: i32) -> (i32, i32, i32) {
    %c0_i32 = arith.constant 0 : i32
    %c0_i32_0 = arith.constant 0 : i32
    return %arg0, %arg1, %c0_i32 : i32, i32, i32
  }
  func.func @transform_1(%arg0: i32, %arg1: i32) -> (i32, i32) {
    %c0_i32 = arith.constant 0 : i32
    %c0_i32_0 = arith.constant 0 : i32
    %c0_i32_1 = arith.constant 0 : i32
    return %c0_i32, %c0_i32_0 : i32, i32
  }
  func.func @transform_2(%arg0: i32, %arg1: i32) -> (i32, i32) {
    %c0_i32 = arith.constant 0 : i32
    %c0_i32_0 = arith.constant 0 : i32
    %c0_i32_1 = arith.constant 0 : i32
    return %c0_i32, %c0_i32_0 : i32, i32
  }
  func.func @transform_3(%arg0: i32, %arg1: i32) -> (i32, i32) {
    %c0_i32 = arith.constant 0 : i32
    %c0_i32_0 = arith.constant 0 : i32
    %c0_i32_1 = arith.constant 0 : i32
    return %c0_i32, %c0_i32_0 : i32, i32
  }
  func.func @transform_4(%arg0: i32, %arg1: i32) -> (i32, i32) {
    %c0_i32 = arith.constant 0 : i32
    %c0_i32_0 = arith.constant 0 : i32
    %c0_i32_1 = arith.constant 0 : i32
    return %c0_i32, %c0_i32_0 : i32, i32
  }
  func.func @transform_5(%arg0: i32, %arg1: i32) -> (i32, i32, i32) {
    %c0_i32 = arith.constant 0 : i32
    %c0_i32_0 = arith.constant 0 : i32
    return %arg0, %arg1, %c0_i32 : i32, i32, i32
  }
}

</mosaic_0001>

<bundles_post_ra>
// kernel: tpu_custom_call.1
= control target key start
LH: loop header
LB: loop body
LE: loop exit
PB: predicated region body
PF: predicated region fallthrough
CT: control target
= control target key end

     0   :  { %s2329_s18 = smov 0   ;;  %s2331_s19 = smov 0   ;;  %s2723_s0 = inlined_call_operand.vmem [shape: bf16[2,256,288], index: 0, kind: input, shape index: {}]   ;;  %s2724_s1 = inlined_call_operand.vmem [shape: bf16[288,8], index: 1, kind: input, shape index: {}]   ;;  %s2725_s2 = inlined_call_operand.vmem [shape: f32[1,8], index: 2, kind: input, shape index: {}]   ;;  %s2726_s3 = inlined_call_operand.vmem [shape: bf16[8,8], index: 3, kind: input, shape index: {}]   ;;  %s2727_s4 = inlined_call_operand.vmem [shape: f32[1,8], index: 4, kind: input, shape index: {}]   ;;  %s2728_s5 = inlined_call_operand.vmem [shape: bf16[2,256,8], index: 5, kind: output, shape index: {}]  }
   0x1   :  { %s2333_s20 = smov 0  }
   0x2 LB: > { %s27_s21 = sadd.s32 1, %s2293_s19  ;;  %p1779_p0 = scmp.ge.s32.totalorder %s2297_s20, 1  ;;  %s2297_s20 = sphi %s2333_s20, %s15_s20   ;;  %s2293_s19 = sphi %s2331_s19, %s2730_s19   ;;  %s2289_s18 = sphi %s2329_s18, %s2729_s18  }
   0x3   : > { %p29_p1 = scmp.ge.s32.totalorder %s27_s21, 2  ;;  %p209_p2 = scmp.lt.s32.totalorder %s2297_s20, 3 }
   0x5   : > { %s2732_s21 = smov (%p29_p1, %s27_s21), 0  ;;  %p210_p3 = pnand %p1779_p0, %p209_p2 }
   0x6   : > { %v2193_v0 = vld [vmem:[%s2724_s1 + $0x40] sm:$0xff] (!%p210_p3)   ;;  %v2195_v2 = vld [vmem:[%s2724_s1 + $0x48] sm:$0xff] (!%p210_p3)   ;;  %p247_p4 = scmp.lt.s32.totalorder (!%p210_p3), %s2289_s18, 1  ;;  %v2197_v4 = vld [vmem:[%s2724_s1 + $0x50] sm:$0xff] (!%p210_p3)   ;;  %vm723_vm0 = vcmask (!%p210_p3), 261120   ;;  %vm1263_vm1 = vcmask (!%p210_p3), 1043456  }
   0x7   : > { %213 = sbr.rel (%p210_p3) target bundleno = 608 (0x260), region = 40  ;;  %v2194_v1 = vld [vmem:[%s2724_s1] sm:$0xff] (!%p210_p3)   ;;  %1950 = vmatprep.subr.bf16.mxu0 (!%p210_p3), %v2193_v0  ;;  %v2196_v3 = vld [vmem:[%s2724_s1 + $0x8] sm:$0xff] (!%p210_p3)   ;;  %v2198_v5 = vld [vmem:[%s2724_s1 + $0x10] sm:$0xff] (!%p210_p3)   ;;  %vm1214_vm4 = vcmask (!%p210_p3), 64512  }
   0x8   : > { %1951 = vmatpush3.bf16.msra.mxu0 (!%p210_p3), %v2194_v1  ;;  %v2199_v6 = vld [vmem:[%s2724_s1 + $0x58] sm:$0xff] (!%p210_p3)   ;;  %v2201_v8 = vld [vmem:[%s2724_s1 + $0x60] sm:$0xff] (!%p210_p3)   ;;  %v2203_v11 = vld [vmem:[%s2724_s1 + $0x68] sm:$0xff] (!%p210_p3)  }
   0x9   : > { %1952 = vmatprep.subr.bf16.mxu0 (!%p210_p3), %v2195_v2  ;;  %v2200_v7 = vld [vmem:[%s2724_s1 + $0x18] sm:$0xff] (!%p210_p3)   ;;  %v2202_v9 = vld [vmem:[%s2724_s1 + $0x20] sm:$0xff] (!%p210_p3)   ;;  %v2204_v12 = vld [vmem:[%s2724_s1 + $0x28] sm:$0xff] (!%p210_p3)  }
   0xa   : > { %v2208_v10 = vld [vmem:[%s2724_s1 + $0x80] sm:$0xff] (!%p210_p3)   ;;  %v2205_v13 = vld [vmem:[%s2724_s1 + $0x70] sm:$0xff] (!%p210_p3)   ;;  %v2213_v15 = vld [vmem:[%s2724_s1 + $0x88] sm:$0xff] (!%p210_p3)  }
   0xb   : > { %2097 = vmatprep.subr.bf16.mxu1 (!%p210_p3), %v2208_v10  ;;  %v2206_v18 = vld [vmem:[%s2724_s1 + $0x30] sm:$0xff] (!%p210_p3)   ;;  %v2207_v19 = vld [vmem:[%s2724_s1 + $0x78] sm:$0xff] (!%p210_p3)   ;;  %v1206_v63 = vld [vmem:[%s2726_s3] sm:$0xf] (!%p210_p3) }
   0xc   : > { %1953 = vmatpush3.bf16.msra.mxu0 (!%p210_p3), %v2196_v3  ;;  %2098 = vmatpush3.bf16.msra.mxu1 (!%p210_p3), %v2208_v10  ;;  %v2209_v21 = vld [vmem:[%s2724_s1 + $0x38] sm:$0xff] (!%p210_p3)   ;;  %v1265_v0 = vsel (!%p210_p3), %vm1263_vm1, %v1206_v63, 0 }
   0xd   : > { %1954 = vmatprep.subr.bf16.mxu0 (!%p210_p3), %v2197_v4  ;;  %2099 = vmatprep.subr.bf16.mxu1 (!%p210_p3), %v2213_v15 }
   0xe   : > { %s2734_s18 = smov (!%p247_p4, %s2289_s18), 1 }
   0xf   : > { %s2168_s13 = smul.u32 384, %s2734_s18 }
  0x10   : > { %1955 = vmatpush3.bf16.msra.mxu0 %v2198_v5  ;;  %2100 = vmatpush3.bf16.msra.mxu1 %v2213_v15 }
  0x11   : > { %1956 = vmatprep.subr.bf16.mxu0 %v2199_v6  ;;  %s2386_s26 = scalar_lea.vmem %s2723_s0, %s2168_s13  ;;  %2167 = vmatprep.subr.msk.bf16.mxu1 %vm1263_vm1, %v1206_v63 }
  0x12   : > { %v2212_v14 = vld [vmem:[%s2386_s26 + $0x4] ss:$12 sps:$4 sm:$0xff]   ;;  %v2214_v16 = vld [vmem:[%s2386_s26 + $0x8] ss:$12 sps:$4 sm:$0xff]   ;;  %v2215_v17 = vld [vmem:[%s2386_s26 + $0x20] ss:$12 sps:$4 sm:$0xff]  }
  0x13   : > { %804 = vmatprep.mubr.bf16.mxu0 %v2212_v14  ;;  %2101 = vmatprep.mubr.msk.bf16.mxu1 %vm723_vm0, %v2214_v16  ;;  %v2222_v20 = vld [vmem:[%s2386_s26 + $0x38] ss:$12 sps:$4 sm:$0xff]   ;;  %v2210_v22 = vld [vmem:[%s2386_s26] ss:$12 sps:$4 sm:$0xff]   ;;  %v2223_v23 = vld [vmem:[%s2386_s26 + $0x50] ss:$12 sps:$4 sm:$0xff]  }
  0x14   : > { %1957 = vmatpush3.bf16.msra.mxu0 %v2200_v7  ;;  %2102 = vmatmul.mubr.msk.bf16.vlgmr.msra.gmra.mrb[0].mxu1 %vm723_vm0, %v2215_v17  ;;  %v2230_v24 = vld [vmem:[%s2386_s26 + $0x68] ss:$12 sps:$4 sm:$0xff]   ;;  %v2218_v26 = vld [vmem:[%s2386_s26 + $0x18] ss:$12 sps:$4 sm:$0xff]   ;;  %v2231_v27 = vld [vmem:[%s2386_s26 + $0x80] ss:$12 sps:$4 sm:$0xff]  }
  0x15   : > { %1958 = vmatprep.subr.bf16.mxu0 %v2201_v8  ;;  %2105 = vmatprep.mubr.msk.bf16.mxu1 %vm723_vm0, %v2222_v20  ;;  %v2216_v25 = vld [vmem:[%s2386_s26 + $0x1c] ss:$12 sps:$4 sm:$0xff]   ;;  %v2238_v28 = vld [vmem:[%s2386_s26 + $0x98] ss:$12 sps:$4 sm:$0xff]   ;;  %v2219_v29 = vld [vmem:[%s2386_s26 + $0x34] ss:$12 sps:$4 sm:$0xff]  }
  0x16   : > { %v2221_v30 = vld [vmem:[%s2386_s26 + $0x30] ss:$12 sps:$4 sm:$0xff]   ;;  %v2246_v32 = vld [vmem:[%s2386_s26 + $0xc8] ss:$12 sps:$4 sm:$0xff]   ;;  %v2224_v33 = vld [vmem:[%s2386_s26 + $0x4c] ss:$12 sps:$4 sm:$0xff]   ;;  %2134 = vmatpush3.bf16.msra.mxu1 %v1265_v0 }
  0x17   : > { %v2239_v31 = vld [vmem:[%s2386_s26 + $0xb0] ss:$12 sps:$4 sm:$0xff]   ;;  %v2226_v34 = vld [vmem:[%s2386_s26 + $0x48] ss:$12 sps:$4 sm:$0xff]   ;;  %v2247_v35 = vld [vmem:[%s2386_s26 + $0xe0] ss:$12 sps:$4 sm:$0xff]  }
  0x18   : > { %1959 = vmatpush3.bf16.msra.mxu0 %v2202_v9  ;;  %v2254_v36 = vld [vmem:[%s2386_s26 + $0xf8] ss:$12 sps:$4 sm:$0xff]   ;;  %v2255_v38 = vld [vmem:[%s2386_s26 + $0x110] ss:$12 sps:$4 sm:$0xff]   ;;  %v2229_v39 = vld [vmem:[%s2386_s26 + $0x60] ss:$12 sps:$4 sm:$0xff]  }
  0x19   : > { %1960 = vmatprep.subr.bf16.mxu0 %v2203_v11  ;;  %v2227_v37 = vld [vmem:[%s2386_s26 + $0x64] ss:$12 sps:$4 sm:$0xff]   ;;  %v2262_v40 = vld [vmem:[%s2386_s26 + $0x128] ss:$12 sps:$4 sm:$0xff]   ;;  %v2263_v42 = vld [vmem:[%s2386_s26 + $0x140] ss:$12 sps:$4 sm:$0xff]  }
  0x1a   : > { %v2232_v41 = vld [vmem:[%s2386_s26 + $0x7c] ss:$12 sps:$4 sm:$0xff]   ;;  %v2234_v43 = vld [vmem:[%s2386_s26 + $0x78] ss:$12 sps:$4 sm:$0xff]   ;;  %v2235_v45 = vld [vmem:[%s2386_s26 + $0x94] ss:$12 sps:$4 sm:$0xff]  }
  0x1b   : > { %v2270_v44 = vld [vmem:[%s2386_s26 + $0x158] ss:$12 sps:$4 sm:$0xff]   ;;  %v2271_v46 = vld [vmem:[%s2386_s26 + $0x170] ss:$12 sps:$4 sm:$0xff]   ;;  %v2242_v49 = vld [vmem:[%s2386_s26 + $0xa8] ss:$12 sps:$4 sm:$0xff]  }
  0x1c   : > { %1961 = vmatpush3.bf16.msra.mxu0 %v2204_v12  ;;  %2106 = vmatmul.mubr.msk.bf16.gmra.mrb[4].mxu1 %vm723_vm0, %v2223_v23  ;;  %v2237_v47 = vld [vmem:[%s2386_s26 + $0x90] ss:$12 sps:$4 sm:$0xff]   ;;  %v2240_v48 = vld [vmem:[%s2386_s26 + $0xac] ss:$12 sps:$4 sm:$0xff]   ;;  %v2251_v54 = vld [vmem:[%s2386_s26 + $0xf4] ss:$12 sps:$4 sm:$0xff]  }
  0x1d   : > { %1962 = vmatprep.subr.bf16.mxu0 %v2205_v13  ;;  %2109 = vmatprep.mubr.msk.bf16.mxu1 %vm723_vm0, %v2230_v24  ;;  %v2243_v50 = vld [vmem:[%s2386_s26 + $0xc4] ss:$12 sps:$4 sm:$0xff]   ;;  %v2245_v51 = vld [vmem:[%s2386_s26 + $0xc0] ss:$12 sps:$4 sm:$0xff]   ;;  %v2248_v52 = vld [vmem:[%s2386_s26 + $0xdc] ss:$12 sps:$4 sm:$0xff]  }
  0x1e   : > { %v2250_v53 = vld [vmem:[%s2386_s26 + $0xd8] ss:$12 sps:$4 sm:$0xff]   ;;  %v2253_v55 = vld [vmem:[%s2386_s26 + $0xf0] ss:$12 sps:$4 sm:$0xff]   ;;  %v2258_v57 = vld [vmem:[%s2386_s26 + $0x108] ss:$12 sps:$4 sm:$0xff]  }
  0x1f   : > { %v2256_v56 = vld [vmem:[%s2386_s26 + $0x10c] ss:$12 sps:$4 sm:$0xff]   ;;  %v2259_v58 = vld [vmem:[%s2386_s26 + $0x124] ss:$12 sps:$4 sm:$0xff]   ;;  %v2264_v60 = vld [vmem:[%s2386_s26 + $0x13c] ss:$12 sps:$4 sm:$0xff]  }
  0x20   : > { %1963 = vmatpush3.bf16.msra.mxu0 %v2206_v18  ;;  %v2261_v59 = vld [vmem:[%s2386_s26 + $0x120] ss:$12 sps:$4 sm:$0xff]   ;;  %v2266_v61 = vld [vmem:[%s2386_s26 + $0x138] ss:$12 sps:$4 sm:$0xff]   ;;  %v2269_v1 = vld [vmem:[%s2386_s26 + $0x150] ss:$12 sps:$4 sm:$0xff]  }
  0x21   : > { %1964 = vmatprep.subr.bf16.mxu0 %v2207_v19  ;;  %v2267_v62 = vld [vmem:[%s2386_s26 + $0x154] ss:$12 sps:$4 sm:$0xff]   ;;  %v2272_v2 = vld [vmem:[%s2386_s26 + $0x16c] ss:$12 sps:$4 sm:$0xff]  }
  0x22   : > { %v2274_v3 = vld [vmem:[%s2386_s26 + $0x168] ss:$12 sps:$4 sm:$0xff]   ;;  %v2481_v12 = vld [vmem:[%s2725_s2] ss:$0 sm:$0xff]  ;;  %s1917_s26 = sshll.u32 %s2734_s18, 7 }
  0x23   : > { %s2620_s29 = scalar_lea.vmem %s2728_s5, %s1917_s26 }
  0x24   : > { %1965 = vmatpush3.bf16.msra.mxu0 %v2209_v21  ;;  %2110 = vmatmul.mubr.msk.bf16.gmra.mrb[8].mxu1 %vm723_vm0, %v2231_v27 }
  0x25   : > { %2113 = vmatprep.mubr.msk.bf16.mxu1 %vm723_vm0, %v2238_v28 }
  0x27   : > { %805 = vmatmul.mubr.bf16.vlgmr.msra.gmra.mrb[0].mxu0 %v2210_v22 }
  0x28   : > { %812 = vmatprep.mubr.bf16.mxu0 %v2216_v25 }
  0x2c   : > { %2114 = vmatmul.mubr.msk.bf16.gmra.mrb[12].mxu1 %vm723_vm0, %v2239_v31 }
  0x2d   : > { %2117 = vmatprep.mubr.msk.bf16.mxu1 %vm723_vm0, %v2246_v32 }
  0x2f   : > { %813 = vmatmul.mubr.bf16.gmra.mrb[4].mxu0 %v2218_v26 }
  0x30   : > { %820 = vmatprep.mubr.bf16.mxu0 %v2219_v29 }
  0x34   : > { %2118 = vmatmul.mubr.msk.bf16.gmra.mrb[16].mxu1 %vm723_vm0, %v2247_v35 }
  0x35   : > { %2121 = vmatprep.mubr.msk.bf16.mxu1 %vm723_vm0, %v2254_v36 }
  0x37   : > { %821 = vmatmul.mubr.bf16.gmra.mrb[8].mxu0 %v2221_v30 }
  0x38   : > { %828 = vmatprep.mubr.bf16.mxu0 %v2224_v33 }
  0x3c   : > { %2122 = vmatmul.mubr.msk.bf16.gmra.mrb[20].mxu1 %vm723_vm0, %v2255_v38 }
  0x3d   : > { %2125 = vmatprep.mubr.msk.bf16.mxu1 %vm723_vm0, %v2262_v40 }
  0x3f   : > { %829 = vmatmul.mubr.bf16.gmra.mrb[12].mxu0 %v2226_v34 }
  0x40   : > { %836 = vmatprep.mubr.bf16.mxu0 %v2227_v37 }
  0x44   : > { %2126 = vmatmul.mubr.msk.bf16.gmra.mrb[24].mxu1 %vm723_vm0, %v2263_v42 }
  0x45   : > { %2129 = vmatprep.mubr.msk.bf16.mxu1 %vm723_vm0, %v2270_v44 }
  0x47   : > { %837 = vmatmul.mubr.bf16.gmra.mrb[16].mxu0 %v2229_v39 }
  0x48   : > { %844 = vmatprep.mubr.bf16.mxu0 %v2232_v41 }
  0x4c   : > { %2130 = vmatmul.mubr.msk.bf16.gmra.mrb[28].mxu1 %vm723_vm0, %v2271_v46 }
  0x4f   : > { %845 = vmatmul.mubr.bf16.gmra.mrb[20].mxu0 %v2234_v43 }
  0x50   : > { %852 = vmatprep.mubr.bf16.mxu0 %v2235_v45 }
  0x57   : > { %853 = vmatmul.mubr.bf16.gmra.mrb[24].mxu0 %v2237_v47 }
  0x58   : > { %860 = vmatprep.mubr.bf16.mxu0 %v2240_v48 }
  0x5f   : > { %861 = vmatmul.mubr.bf16.gmra.mrb[28].mxu0 %v2242_v49 }
  0x60   : > { %868 = vmatprep.mubr.bf16.mxu0 %v2243_v50 }
  0x67   : > { %869 = vmatmul.mubr.bf16.gmra.mrb[32].mxu0 %v2245_v51 }
  0x68   : > { %876 = vmatprep.mubr.bf16.mxu0 %v2248_v52 }
  0x6f   : > { %877 = vmatmul.mubr.bf16.gmra.mrb[36].mxu0 %v2250_v53 }
  0x70   : > { %884 = vmatprep.mubr.bf16.mxu0 %v2251_v54 }
  0x77   : > { %885 = vmatmul.mubr.bf16.gmra.mrb[40].mxu0 %v2253_v55 }
  0x78   : > { %892 = vmatprep.mubr.bf16.mxu0 %v2256_v56 }
  0x7f   : > { %893 = vmatmul.mubr.bf16.gmra.mrb[44].mxu0 %v2258_v57 }
  0x80   : > { %900 = vmatprep.mubr.bf16.mxu0 %v2259_v58 }
  0x87   : > { %901 = vmatmul.mubr.bf16.gmra.mrb[48].mxu0 %v2261_v59 }
  0x88   : > { %908 = vmatprep.mubr.bf16.mxu0 %v2264_v60 }
  0x8f   : > { %909 = vmatmul.mubr.bf16.gmra.mrb[52].mxu0 %v2266_v61 }
  0x90   : > { %916 = vmatprep.mubr.bf16.mxu0 %v2267_v62 }
  0x97   : > { %917 = vmatmul.mubr.bf16.gmra.mrb[56].mxu0 %v2269_v1 }
  0x98   : > { %924 = vmatprep.mubr.bf16.mxu0 %v2272_v2 }
  0x9f   : > { %925 = vmatmul.mubr.bf16.gmra.mrb[60].mxu0 %v2274_v3 }
  0xe7   : > { %v2103_v4 = vpop.f32.mrb[0].mxu1 }
  0xe8   : > { %v967_v5 = vpop.f32.mrb[1].mxu1 }
  0xe9   : > { %v2104_v6 = vpop.f32.mrb[2].mxu1 }
  0xea   : > { %v970_v7 = vpop.f32.mrb[3].mxu1 }
  0xef   : > { %v2476_v8 = vpop.f32.mrb[4].mxu1 }
  0xf0   : > { %v983_v10 = vpop.f32.mrb[5].mxu1 }
  0xf1   : > { %v2483_v13 = vpop.f32.mrb[6].mxu1 }
  0xf2   : > { %v986_v16 = vpop.f32.mrb[7].mxu1 }
  0xf7   : > { %v2487_v22 = vpop.f32.mrb[8].mxu1 }
  0xf8   : > { %v2489_v26 = vpop.f32.mrb[9].mxu1 }
  0xf9   : > { %v2491_v28 = vpop.f32.mrb[10].mxu1 }
  0xfa   : > { %v1966_v9 = vpop.f32.mrb[0].mxu0  ;;  %v2493_v32 = vpop.f32.mrb[11].mxu1 }
  0xfb   : > { %v1967_v11 = vpop.f32.mrb[1].mxu0 }
  0xfc   : > { %v1968_v14 = vadd.f32 %v1967_v11, %v1966_v9  ;;  %v1969_v15 = vpop.f32.mrb[2].mxu0 }
  0xfd   : > { %v1970_v17 = vpop.f32.mrb[3].mxu0 }
  0xfe   : > { %v1971_v18 = vadd.f32 %v1970_v17, %v1969_v15  ;;  %v807_v19 = vadd.f32 %v1968_v14, %v2481_v12 }
  0xff   : > { %v2498_v41 = vpop.f32.mrb[12].mxu1 }
 0x100   : > { %v968_v20 = vadd.f32 %v967_v5, %v807_v19  ;;  %v810_v21 = vadd.f32 %v1971_v18, %v2481_v12  ;;  %v2500_v45 = vpop.f32.mrb[13].mxu1 }
 0x101   : > { %v2502_v47 = vpop.f32.mrb[14].mxu1 }
 0x102   : > { %v1126_v23 = vmul.f32 0.2, %v968_v20  ;;  %v971_v24 = vadd.f32 %v970_v7, %v810_v21  ;;  %v1972_v25 = vpop.f32.mrb[4].mxu0  ;;  %vm1094_vm2 = vcmp.gt.f32.partialorder %v968_v20, 0.0  ;;  %v2504_v51 = vpop.f32.mrb[15].mxu1 }
 0x103   : > { %v1973_v27 = vpop.f32.mrb[5].mxu0 }
 0x104   : > { %vm1095_vm3 = vcmp.gt.f32.partialorder %v971_v24, 0.0  ;;  %v1127_v29 = vmul.f32 0.2, %v971_v24  ;;  %v1974_v30 = vadd.f32 %v1973_v27, %v1972_v25  ;;  %v1975_v31 = vpop.f32.mrb[6].mxu0  ;;  %v1158_v34 = vsel %vm1094_vm2, %v968_v20, %v1126_v23 }
 0x105   : > { %v1976_v33 = vpop.f32.mrb[7].mxu0 }
 0x106   : > { %v1159_v35 = vsel %vm1095_vm3, %v971_v24, %v1127_v29  ;;  %v815_v36 = vadd.f32 %v1974_v30, %v2481_v12  ;;  %v1977_v37 = vadd.f32 %v1976_v33, %v1975_v31 }
 0x107   : > { %v1190_v38 = vpack.c.bf16 %v1159_v35, %v1158_v34  ;;  %v2509_v60 = vpop.f32.mrb[16].mxu1 }
 0x108   : > { %v976_v39 = vadd.f32 %v2103_v4, %v815_v36  ;;  %v818_v40 = vadd.f32 %v1977_v37, %v2481_v12  ;;  %v2511_v0 = vpop.f32.mrb[17].mxu1 }
 0x109   : > { %2135 = vmatprep.mubr.msk.bf16.mxu1 %vm1214_vm4, %v1190_v38  ;;  %v2513_v2 = vpop.f32.mrb[18].mxu1 }
 0x10a   : > { %v1128_v42 = vmul.f32 0.2, %v976_v39  ;;  %v979_v43 = vadd.f32 %v2104_v6, %v818_v40  ;;  %v1978_v44 = vpop.f32.mrb[8].mxu0  ;;  %vm1096_vm5 = vcmp.gt.f32.partialorder %v976_v39, 0.0  ;;  %v2515_v6 = vpop.f32.mrb[19].mxu1 }
 0x10b   : > { %v1979_v46 = vpop.f32.mrb[9].mxu0 }
 0x10c   : > { %vm1097_vm6 = vcmp.gt.f32.partialorder %v979_v43, 0.0  ;;  %v1129_v48 = vmul.f32 0.2, %v979_v43  ;;  %v1980_v49 = vadd.f32 %v1979_v46, %v1978_v44  ;;  %v1981_v50 = vpop.f32.mrb[10].mxu0  ;;  %v1160_v53 = vsel %vm1096_vm5, %v976_v39, %v1128_v42 }
 0x10d   : > { %v1982_v52 = vpop.f32.mrb[11].mxu0 }
 0x10e   : > { %v1161_v54 = vsel %vm1097_vm6, %v979_v43, %v1129_v48  ;;  %v1983_v55 = vadd.f32 %v1982_v52, %v1981_v50  ;;  %v823_v56 = vadd.f32 %v1980_v49, %v2481_v12 }
 0x10f   : > { %v1191_v57 = vpack.c.bf16 %v1161_v54, %v1160_v53  ;;  %v2521_v18 = vpop.f32.mrb[20].mxu1 }
 0x110   : > { %v984_v58 = vadd.f32 %v983_v10, %v823_v56  ;;  %v826_v59 = vadd.f32 %v1983_v55, %v2481_v12  ;;  %v2524_v23 = vpop.f32.mrb[21].mxu1 }
 0x111   : > { %2136 = vmatmul.mubr.msk.bf16.vlgmr.msra.gmra.mrb[32].mxu1 %vm1214_vm4, %v1191_v57  ;;  %v2526_v25 = vpop.f32.mrb[22].mxu1 }
 0x112   : > { %v1130_v61 = vmul.f32 0.2, %v984_v58  ;;  %v987_v62 = vadd.f32 %v986_v16, %v826_v59  ;;  %v1984_v63 = vpop.f32.mrb[12].mxu0  ;;  %vm1098_vm7 = vcmp.gt.f32.partialorder %v984_v58, 0.0  ;;  %v2528_v30 = vpop.f32.mrb[23].mxu1 }
 0x113   : > { %v1985_v1 = vpop.f32.mrb[13].mxu0 }
 0x114   : > { %vm1099_vm8 = vcmp.gt.f32.partialorder %v987_v62, 0.0  ;;  %v1131_v3 = vmul.f32 0.2, %v987_v62  ;;  %v1986_v4 = vadd.f32 %v1985_v1, %v1984_v63  ;;  %v1987_v5 = vpop.f32.mrb[14].mxu0  ;;  %v1162_v9 = vsel %vm1098_vm7, %v984_v58, %v1130_v61 }
 0x115   : > { %v1988_v7 = vpop.f32.mrb[15].mxu0 }
 0x116   : > { %v1163_v10 = vsel %vm1099_vm8, %v987_v62, %v1131_v3  ;;  %v831_v11 = vadd.f32 %v1986_v4, %v2481_v12  ;;  %v1989_v14 = vadd.f32 %v1988_v7, %v1987_v5 }
 0x117   : > { %v1192_v15 = vpack.c.bf16 %v1163_v10, %v1162_v9  ;;  %v2534_v39 = vpop.f32.mrb[24].mxu1 }
 0x118   : > { %v992_v16 = vadd.f32 %v2476_v8, %v831_v11  ;;  %v834_v17 = vadd.f32 %v1989_v14, %v2481_v12  ;;  %v2537_v44 = vpop.f32.mrb[25].mxu1 }
 0x119   : > { %2139 = vmatprep.mubr.msk.bf16.mxu1 %vm1214_vm4, %v1192_v15  ;;  %v2539_v48 = vpop.f32.mrb[26].mxu1 }
 0x11a   : > { %v1132_v19 = vmul.f32 0.2, %v992_v16  ;;  %v995_v20 = vadd.f32 %v2483_v13, %v834_v17  ;;  %v1990_v21 = vpop.f32.mrb[16].mxu0  ;;  %vm1100_vm9 = vcmp.gt.f32.partialorder %v992_v16, 0.0  ;;  %v2541_v52 = vpop.f32.mrb[27].mxu1 }
 0x11b   : > { %v1991_v24 = vpop.f32.mrb[17].mxu0 }
 0x11c   : > { %vm1101_vm10 = vcmp.gt.f32.partialorder %v995_v20, 0.0  ;;  %v1133_v27 = vmul.f32 0.2, %v995_v20  ;;  %v1992_v29 = vadd.f32 %v1991_v24, %v1990_v21  ;;  %v1993_v8 = vpop.f32.mrb[18].mxu0  ;;  %v1164_v35 = vsel %vm1100_vm9, %v992_v16, %v1132_v19 }
 0x11d   : > { %v1994_v31 = vpop.f32.mrb[19].mxu0 }
 0x11e   : > { %v1995_v33 = vadd.f32 %v1994_v31, %v1993_v8  ;;  %v839_v34 = vadd.f32 %v1992_v29, %v2481_v12  ;;  %v1165_v36 = vsel %vm1101_vm10, %v995_v20, %v1133_v27 }
 0x11f   : > { %v1193_v13 = vpack.c.bf16 %v1165_v36, %v1164_v35  ;;  %v2547_v61 = vpop.f32.mrb[28].mxu1 }
 0x120   : > { %v1000_v37 = vadd.f32 %v2489_v26, %v839_v34  ;;  %v842_v38 = vadd.f32 %v1995_v33, %v2481_v12  ;;  %v2550_v3 = vpop.f32.mrb[29].mxu1 }
 0x121   : > { %2140 = vmatmul.mubr.msk.bf16.gmra.mrb[36].mxu1 %vm1214_vm4, %v1193_v13  ;;  %v2552_v5 = vpop.f32.mrb[30].mxu1 }
 0x122   : > { %v1134_v40 = vmul.f32 0.2, %v1000_v37  ;;  %v1003_v42 = vadd.f32 %v2493_v32, %v842_v38  ;;  %v1996_v43 = vpop.f32.mrb[20].mxu0  ;;  %vm1102_vm11 = vcmp.gt.f32.partialorder %v1000_v37, 0.0  ;;  %v2554_v10 = vpop.f32.mrb[31].mxu1 }
 0x123   : > { %v1997_v46 = vpop.f32.mrb[21].mxu0 }
 0x124   : > { %vm1103_vm12 = vcmp.gt.f32.partialorder %v1003_v42, 0.0  ;;  %v1135_v49 = vmul.f32 0.2, %v1003_v42  ;;  %v1998_v50 = vadd.f32 %v1997_v46, %v1996_v43  ;;  %v1999_v26 = vpop.f32.mrb[22].mxu0  ;;  %v1166_v54 = vsel %vm1102_vm11, %v1000_v37, %v1134_v40 }
 0x125   : > { %v2000_v53 = vpop.f32.mrb[23].mxu0 }
 0x126   : > { %v1167_v55 = vsel %vm1103_vm12, %v1003_v42, %v1135_v49  ;;  %v847_v56 = vadd.f32 %v1998_v50, %v2481_v12  ;;  %v2001_v57 = vadd.f32 %v2000_v53, %v1999_v26 }
 0x127   : > { %v1194_v32 = vpack.c.bf16 %v1167_v55, %v1166_v54 }
 0x128   : > { %v1008_v58 = vadd.f32 %v2487_v22, %v847_v56  ;;  %v850_v59 = vadd.f32 %v2001_v57, %v2481_v12 }
 0x129   : > { %2143 = vmatprep.mubr.msk.bf16.mxu1 %vm1214_vm4, %v1194_v32 }
 0x12a   : > { %v1136_v62 = vmul.f32 0.2, %v1008_v58  ;;  %v1011_v63 = vadd.f32 %v2491_v28, %v850_v59  ;;  %v2002_v1 = vpop.f32.mrb[24].mxu0  ;;  %vm1104_vm13 = vcmp.gt.f32.partialorder %v1008_v58, 0.0 }
 0x12b   : > { %v2003_v4 = vpop.f32.mrb[25].mxu0 }
 0x12c   : > { %vm1105_vm14 = vcmp.gt.f32.partialorder %v1011_v63, 0.0  ;;  %v1137_v7 = vmul.f32 0.2, %v1011_v63  ;;  %v2004_v9 = vadd.f32 %v2003_v4, %v2002_v1  ;;  %v2005_v22 = vpop.f32.mrb[26].mxu0  ;;  %v1168_v16 = vsel %vm1104_vm13, %v1008_v58, %v1136_v62 }
 0x12d   : > { %v2006_v11 = vpop.f32.mrb[27].mxu0 }
 0x12e   : > { %v2007_v14 = vadd.f32 %v2006_v11, %v2005_v22  ;;  %v855_v15 = vadd.f32 %v2004_v9, %v2481_v12  ;;  %v1169_v17 = vsel %vm1105_vm14, %v1011_v63, %v1137_v7 }
 0x12f   : > { %v1195_v28 = vpack.c.bf16 %v1169_v17, %v1168_v16 }
 0x130   : > { %v1016_v19 = vadd.f32 %v2500_v45, %v855_v15  ;;  %v858_v20 = vadd.f32 %v2007_v14, %v2481_v12 }
 0x131   : > { %2144 = vmatmul.mubr.msk.bf16.gmra.mrb[40].mxu1 %vm1214_vm4, %v1195_v28 }
 0x132   : > { %v1138_v21 = vmul.f32 0.2, %v1016_v19  ;;  %v1019_v24 = vadd.f32 %v2504_v51, %v858_v20  ;;  %v2008_v27 = vpop.f32.mrb[28].mxu0  ;;  %vm1106_vm15 = vcmp.gt.f32.partialorder %v1016_v19, 0.0 }
 0x133   : > { %v2009_v29 = vpop.f32.mrb[29].mxu0 }
 0x134   : > { %vm1107_vm0 = vcmp.gt.f32.partialorder %v1019_v24, 0.0  ;;  %v1139_v8 = vmul.f32 0.2, %v1019_v24  ;;  %v2010_v31 = vadd.f32 %v2009_v29, %v2008_v27  ;;  %v2011_v33 = vpop.f32.mrb[30].mxu0  ;;  %v1170_v35 = vsel %vm1106_vm15, %v1016_v19, %v1138_v21 }
 0x135   : > { %v2012_v34 = vpop.f32.mrb[31].mxu0 }
 0x136   : > { %v1171_v36 = vsel %vm1107_vm0, %v1019_v24, %v1139_v8  ;;  %v863_v13 = vadd.f32 %v2010_v31, %v2481_v12  ;;  %v2013_v45 = vadd.f32 %v2012_v34, %v2011_v33 }
 0x137   : > { %v1196_v37 = vpack.c.bf16 %v1171_v36, %v1170_v35 }
 0x138   : > { %v1024_v38 = vadd.f32 %v2498_v41, %v863_v13  ;;  %v866_v40 = vadd.f32 %v2013_v45, %v2481_v12 }
 0x139   : > { %2147 = vmatprep.mubr.msk.bf16.mxu1 %vm1214_vm4, %v1196_v37 }
 0x13a   : > { %v1140_v51 = vmul.f32 0.2, %v1024_v38  ;;  %v1027_v42 = vadd.f32 %v2502_v47, %v866_v40  ;;  %v2014_v43 = vpop.f32.mrb[32].mxu0  ;;  %vm1108_vm1 = vcmp.gt.f32.partialorder %v1024_v38, 0.0 }
 0x13b   : > { %v2015_v46 = vpop.f32.mrb[33].mxu0 }
 0x13c   : > { %vm1109_vm2 = vcmp.gt.f32.partialorder %v1027_v42, 0.0  ;;  %v1141_v49 = vmul.f32 0.2, %v1027_v42  ;;  %v2016_v50 = vadd.f32 %v2015_v46, %v2014_v43  ;;  %v2017_v26 = vpop.f32.mrb[34].mxu0  ;;  %v1172_v56 = vsel %vm1108_vm1, %v1024_v38, %v1140_v51 }
 0x13d   : > { %v2018_v53 = vpop.f32.mrb[35].mxu0 }
 0x13e   : > { %v2019_v54 = vadd.f32 %v2018_v53, %v2017_v26  ;;  %v871_v55 = vadd.f32 %v2016_v50, %v2481_v12  ;;  %v1173_v41 = vsel %vm1109_vm2, %v1027_v42, %v1141_v49 }
 0x13f   : > { %v1197_v57 = vpack.c.bf16 %v1173_v41, %v1172_v56 }
 0x140   : > { %v1032_v32 = vadd.f32 %v2511_v0, %v871_v55  ;;  %v874_v58 = vadd.f32 %v2019_v54, %v2481_v12 }
 0x141   : > { %2148 = vmatmul.mubr.msk.bf16.gmra.mrb[44].mxu1 %vm1214_vm4, %v1197_v57 }
 0x142   : > { %v1142_v47 = vmul.f32 0.2, %v1032_v32  ;;  %v1035_v59 = vadd.f32 %v2515_v6, %v874_v58  ;;  %v2020_v62 = vpop.f32.mrb[36].mxu0  ;;  %vm1110_vm3 = vcmp.gt.f32.partialorder %v1032_v32, 0.0 }
 0x143   : > { %v2021_v63 = vpop.f32.mrb[37].mxu0 }
 0x144   : > { %vm1111_vm5 = vcmp.gt.f32.partialorder %v1035_v59, 0.0  ;;  %v1143_v1 = vmul.f32 0.2, %v1035_v59  ;;  %v2022_v4 = vadd.f32 %v2021_v63, %v2020_v62  ;;  %v2023_v7 = vpop.f32.mrb[38].mxu0  ;;  %v1174_v22 = vsel %vm1110_vm3, %v1032_v32, %v1142_v47 }
 0x145   : > { %v2024_v9 = vpop.f32.mrb[39].mxu0 }
 0x146   : > { %v1175_v11 = vsel %vm1111_vm5, %v1035_v59, %v1143_v1  ;;  %v879_v14 = vadd.f32 %v2022_v4, %v2481_v12  ;;  %v2025_v0 = vadd.f32 %v2024_v9, %v2023_v7 }
 0x147   : > { %v1198_v15 = vpack.c.bf16 %v1175_v11, %v1174_v22 }
 0x148   : > { %v1040_v16 = vadd.f32 %v2509_v60, %v879_v14  ;;  %v882_v17 = vadd.f32 %v2025_v0, %v2481_v12 }
 0x149   : > { %2151 = vmatprep.mubr.msk.bf16.mxu1 %vm1214_vm4, %v1198_v15 }
 0x14a   : > { %v1144_v6 = vmul.f32 0.2, %v1040_v16  ;;  %v1043_v28 = vadd.f32 %v2513_v2, %v882_v17  ;;  %v2026_v19 = vpop.f32.mrb[40].mxu0  ;;  %vm1112_vm6 = vcmp.gt.f32.partialorder %v1040_v16, 0.0 }
 0x14b   : > { %v2027_v20 = vpop.f32.mrb[41].mxu0 }
 0x14c   : > { %vm1113_vm7 = vcmp.gt.f32.partialorder %v1043_v28, 0.0  ;;  %v1145_v21 = vmul.f32 0.2, %v1043_v28  ;;  %v2028_v24 = vadd.f32 %v2027_v20, %v2026_v19  ;;  %v2029_v27 = vpop.f32.mrb[42].mxu0  ;;  %v1176_v33 = vsel %vm1112_vm6, %v1040_v16, %v1144_v6 }
 0x14d   : > { %v2030_v29 = vpop.f32.mrb[43].mxu0 }
 0x14e   : > { %v2031_v8 = vadd.f32 %v2030_v29, %v2029_v27  ;;  %v887_v31 = vadd.f32 %v2028_v24, %v2481_v12  ;;  %v1177_v60 = vsel %vm1113_vm7, %v1043_v28, %v1145_v21 }
 0x14f   : > { %v1199_v34 = vpack.c.bf16 %v1177_v60, %v1176_v33 }
 0x150   : > { %v1048_v35 = vadd.f32 %v2524_v23, %v887_v31  ;;  %v890_v36 = vadd.f32 %v2031_v8, %v2481_v12 }
 0x151   : > { %2152 = vmatmul.mubr.msk.bf16.gmra.mrb[48].mxu1 %vm1214_vm4, %v1199_v34 }
 0x152   : > { %v1146_v2 = vmul.f32 0.2, %v1048_v35  ;;  %v1051_v13 = vadd.f32 %v2528_v30, %v890_v36  ;;  %v2032_v45 = vpop.f32.mrb[44].mxu0  ;;  %vm1114_vm8 = vcmp.gt.f32.partialorder %v1048_v35, 0.0 }
 0x153   : > { %v2033_v37 = vpop.f32.mrb[45].mxu0 }
 0x154   : > { %vm1115_vm9 = vcmp.gt.f32.partialorder %v1051_v13, 0.0  ;;  %v1147_v38 = vmul.f32 0.2, %v1051_v13  ;;  %v2034_v40 = vadd.f32 %v2033_v37, %v2032_v45  ;;  %v2035_v51 = vpop.f32.mrb[46].mxu0  ;;  %v1178_v43 = vsel %vm1114_vm8, %v1048_v35, %v1146_v2 }
 0x155   : > { %v2036_v42 = vpop.f32.mrb[47].mxu0 }
 0x156   : > { %v1179_v46 = vsel %vm1115_vm9, %v1051_v13, %v1147_v38  ;;  %v895_v49 = vadd.f32 %v2034_v40, %v2481_v12  ;;  %v2037_v23 = vadd.f32 %v2036_v42, %v2035_v51 }
 0x157   : > { %v1200_v50 = vpack.c.bf16 %v1179_v46, %v1178_v43 }
 0x158   : > { %v1056_v26 = vadd.f32 %v2521_v18, %v895_v49  ;;  %v898_v53 = vadd.f32 %v2037_v23, %v2481_v12 }
 0x159   : > { %2155 = vmatprep.mubr.msk.bf16.mxu1 %vm1214_vm4, %v1200_v50 }
 0x15a   : > { %v1148_v30 = vmul.f32 0.2, %v1056_v26  ;;  %v1059_v54 = vadd.f32 %v2526_v25, %v898_v53  ;;  %v2038_v55 = vpop.f32.mrb[48].mxu0  ;;  %vm1116_vm10 = vcmp.gt.f32.partialorder %v1056_v26, 0.0 }
 0x15b   : > { %v2039_v56 = vpop.f32.mrb[49].mxu0 }
 0x15c   : > { %vm1117_vm11 = vcmp.gt.f32.partialorder %v1059_v54, 0.0  ;;  %v1149_v41 = vmul.f32 0.2, %v1059_v54  ;;  %v2040_v57 = vadd.f32 %v2039_v56, %v2038_v55  ;;  %v2041_v32 = vpop.f32.mrb[50].mxu0  ;;  %v1180_v62 = vsel %vm1116_vm10, %v1056_v26, %v1148_v30 }
 0x15d   : > { %v2042_v58 = vpop.f32.mrb[51].mxu0 }
 0x15e   : > { %v2043_v47 = vadd.f32 %v2042_v58, %v2041_v32  ;;  %v903_v59 = vadd.f32 %v2040_v57, %v2481_v12  ;;  %v1181_v18 = vsel %vm1117_vm11, %v1059_v54, %v1149_v41 }
 0x15f   : > { %v1201_v63 = vpack.c.bf16 %v1181_v18, %v1180_v62 }
 0x160   : > { %v1064_v1 = vadd.f32 %v2537_v44, %v903_v59  ;;  %v906_v4 = vadd.f32 %v2043_v47, %v2481_v12 }
 0x161   : > { %2156 = vmatmul.mubr.msk.bf16.gmra.mrb[52].mxu1 %vm1214_vm4, %v1201_v63 }
 0x162   : > { %v1150_v25 = vmul.f32 0.2, %v1064_v1  ;;  %v1067_v7 = vadd.f32 %v2541_v52, %v906_v4  ;;  %v2044_v9 = vpop.f32.mrb[52].mxu0  ;;  %vm1118_vm12 = vcmp.gt.f32.partialorder %v1064_v1, 0.0 }
 0x163   : > { %v2045_v22 = vpop.f32.mrb[53].mxu0 }
 0x164   : > { %vm1119_vm13 = vcmp.gt.f32.partialorder %v1067_v7, 0.0  ;;  %v1151_v11 = vmul.f32 0.2, %v1067_v7  ;;  %v2046_v14 = vadd.f32 %v2045_v22, %v2044_v9  ;;  %v2047_v0 = vpop.f32.mrb[54].mxu0  ;;  %v1182_v16 = vsel %vm1118_vm12, %v1064_v1, %v1150_v25 }
 0x165   : > { %v2048_v15 = vpop.f32.mrb[55].mxu0 }
 0x166   : > { %v1183_v17 = vsel %vm1119_vm13, %v1067_v7, %v1151_v11  ;;  %v911_v6 = vadd.f32 %v2046_v14, %v2481_v12  ;;  %v2049_v44 = vadd.f32 %v2048_v15, %v2047_v0 }
 0x167   : > { %v1202_v28 = vpack.c.bf16 %v1183_v17, %v1182_v16 }
 0x168   : > { %v1072_v19 = vadd.f32 %v2534_v39, %v911_v6  ;;  %v914_v20 = vadd.f32 %v2049_v44, %v2481_v12 }
 0x169   : > { %2159 = vmatprep.mubr.msk.bf16.mxu1 %vm1214_vm4, %v1202_v28 }
 0x16a   : > { %v1152_v52 = vmul.f32 0.2, %v1072_v19  ;;  %v1075_v21 = vadd.f32 %v2539_v48, %v914_v20  ;;  %v2050_v24 = vpop.f32.mrb[56].mxu0  ;;  %vm1120_vm14 = vcmp.gt.f32.partialorder %v1072_v19, 0.0 }
 0x16b   : > { %v2051_v27 = vpop.f32.mrb[57].mxu0 }
 0x16c   : > { %vm1121_vm15 = vcmp.gt.f32.partialorder %v1075_v21, 0.0  ;;  %v1153_v29 = vmul.f32 0.2, %v1075_v21  ;;  %v2052_v8 = vadd.f32 %v2051_v27, %v2050_v24  ;;  %v2053_v31 = vpop.f32.mrb[58].mxu0  ;;  %v1184_v35 = vsel %vm1120_vm14, %v1072_v19, %v1152_v52 }
 0x16d   : > { %v2054_v33 = vpop.f32.mrb[59].mxu0 }
 0x16e   : > { %v2055_v60 = vadd.f32 %v2054_v33, %v2053_v31  ;;  %v919_v34 = vadd.f32 %v2052_v8, %v2481_v12  ;;  %v1185_v39 = vsel %vm1121_vm15, %v1075_v21, %v1153_v29 }
 0x16f   : > { %v1203_v36 = vpack.c.bf16 %v1185_v39, %v1184_v35 }
 0x170   : > { %v1080_v2 = vadd.f32 %v2550_v3, %v919_v34  ;;  %v922_v13 = vadd.f32 %v2055_v60, %v2481_v12 }
 0x171   : > { %2160 = vmatmul.mubr.msk.bf16.gmra.mrb[56].mxu1 %vm1214_vm4, %v1203_v36 }
 0x172   : > { %v1154_v48 = vmul.f32 0.2, %v1080_v2  ;;  %v1083_v45 = vadd.f32 %v2554_v10, %v922_v13  ;;  %v2056_v37 = vpop.f32.mrb[60].mxu0  ;;  %vm1122_vm0 = vcmp.gt.f32.partialorder %v1080_v2, 0.0 }
 0x173   : > { %v2057_v38 = vpop.f32.mrb[61].mxu0 }
 0x174   : > { %vm1123_vm1 = vcmp.gt.f32.partialorder %v1083_v45, 0.0  ;;  %v1155_v40 = vmul.f32 0.2, %v1083_v45  ;;  %v2058_v51 = vadd.f32 %v2057_v38, %v2056_v37  ;;  %v2059_v42 = vpop.f32.mrb[62].mxu0  ;;  %v1186_v46 = vsel %vm1122_vm0, %v1080_v2, %v1154_v48 }
 0x175   : > { %v2060_v43 = vpop.f32.mrb[63].mxu0 }
 0x176   : > { %v1187_v49 = vsel %vm1123_vm1, %v1083_v45, %v1155_v40  ;;  %v927_v23 = vadd.f32 %v2058_v51, %v2481_v12  ;;  %v2061_v3 = vadd.f32 %v2060_v43, %v2059_v42 }
 0x177   : > { %v1204_v50 = vpack.c.bf16 %v1187_v49, %v1186_v46 }
 0x178   : > { %v1088_v26 = vadd.f32 %v2547_v61, %v927_v23  ;;  %v930_v53 = vadd.f32 %v2061_v3, %v2481_v12  ;;  %v2610_v61 = vld [vmem:[%s2727_s4] ss:$0 sm:$0xff] }
 0x179   : > { %2163 = vmatprep.mubr.msk.bf16.mxu1 %vm1214_vm4, %v1204_v50 }
 0x17a   : > { %v1156_v10 = vmul.f32 0.2, %v1088_v26  ;;  %v1091_v30 = vadd.f32 %v2552_v5, %v930_v53  ;;  %vm1124_vm2 = vcmp.gt.f32.partialorder %v1088_v26, 0.0 }
 0x17c   : > { %vm1125_vm3 = vcmp.gt.f32.partialorder %v1091_v30, 0.0  ;;  %v1157_v54 = vmul.f32 0.2, %v1091_v30  ;;  %v1188_v55 = vsel %vm1124_vm2, %v1088_v26, %v1156_v10 }
 0x17e   : > { %v1189_v56 = vsel %vm1125_vm3, %v1091_v30, %v1157_v54 }
 0x17f   : > { %v1205_v41 = vpack.c.bf16 %v1189_v56, %v1188_v55 }
 0x181   : > { %2164 = vmatmul.mubr.msk.bf16.gmra.mrb[60].mxu1 %vm1214_vm4, %v1205_v41  ;;  %vm1652_vm4 = vcmask 60416  }
 0x1e4   : > { %v2137_v57 = vpop.f32.mrb[32].mxu1 }
 0x1e5   : > { %v1310_v12 = vadd.f32 %v2137_v57, %v2610_v61  ;;  %v1301_v32 = vpop.f32.mrb[33].mxu1 }
 0x1e6   : > { %v1302_v5 = vadd.f32 %v2610_v61, %v1301_v32  ;;  %v2138_v58 = vpop.f32.mrb[34].mxu1 }
 0x1e7   : > { %vm1430_vm5 = vcmp.gt.f32.partialorder %v1310_v12, 0.0  ;;  %v1462_v47 = vmul.f32 0.2, %v1310_v12  ;;  %v1313_v59 = vadd.f32 %v2138_v58, %v2610_v61  ;;  %v1304_v62 = vpop.f32.mrb[35].mxu1 }
 0x1e8   : > { %vm1428_vm6 = vcmp.gt.f32.partialorder %v1302_v5, 0.0  ;;  %v1460_v18 = vmul.f32 0.2, %v1302_v5  ;;  %v1305_v63 = vadd.f32 %v2610_v61, %v1304_v62 }
 0x1e9   : > { %v1494_v1 = vsel %vm1430_vm5, %v1310_v12, %v1462_v47  ;;  %vm1431_vm7 = vcmp.gt.f32.partialorder %v1313_v59, 0.0  ;;  %v1463_v4 = vmul.f32 0.2, %v1313_v59 }
 0x1ea   : > { %v1920_v25 = vpack.c.bf16 %v1494_v1, %v1494_v1  ;;  %v1492_v7 = vsel %vm1428_vm6, %v1302_v5, %v1460_v18  ;;  %vm1429_vm8 = vcmp.gt.f32.partialorder %v1305_v63, 0.0  ;;  %v1461_v9 = vmul.f32 0.2, %v1305_v63 }
 0x1eb   : > { %v1918_v22 = vpack.c.bf16 %v1492_v7, %v1492_v7  ;;  %v1495_v11 = vsel %vm1431_vm7, %v1313_v59, %v1463_v4 }
 0x1ec   : > { %1655 = vst.msk [vmem:[%s2620_s29 + $0x8] sm:$0xf] %vm1652_vm4, %v1920_v25  ;;  %v1921_v14 = vpack.c.bf16 %v1495_v11, %v1495_v11  ;;  %v1493_v0 = vsel %vm1429_vm8, %v1305_v63, %v1461_v9 }
 0x1ed   : > { %1653 = vst.msk [vmem:[%s2620_s29] sm:$0xf] %vm1652_vm4, %v1918_v22  ;;  %v1919_v15 = vpack.c.bf16 %v1493_v0, %v1493_v0 }
 0x1ee   : > { %1656 = vst.msk [vmem:[%s2620_s29 + $0xc] sm:$0xf] %vm1652_vm4, %v1921_v14 }
 0x1ef   : > { %1654 = vst.msk [vmem:[%s2620_s29 + $0x4] sm:$0xf] %vm1652_vm4, %v1919_v15 }
 0x1f4   : > { %v2141_v16 = vpop.f32.mrb[36].mxu1 }
 0x1f5   : > { %v1326_v17 = vadd.f32 %v2141_v16, %v2610_v61  ;;  %v1317_v6 = vpop.f32.mrb[37].mxu1 }
 0x1f6   : > { %v1318_v44 = vadd.f32 %v2610_v61, %v1317_v6  ;;  %v2142_v28 = vpop.f32.mrb[38].mxu1 }
 0x1f7   : > { %vm1434_vm9 = vcmp.gt.f32.partialorder %v1326_v17, 0.0  ;;  %v1466_v19 = vmul.f32 0.2, %v1326_v17  ;;  %v1329_v20 = vadd.f32 %v2142_v28, %v2610_v61  ;;  %v1320_v52 = vpop.f32.mrb[39].mxu1 }
 0x1f8   : > { %vm1432_vm10 = vcmp.gt.f32.partialorder %v1318_v44, 0.0  ;;  %v1464_v21 = vmul.f32 0.2, %v1318_v44  ;;  %v1321_v24 = vadd.f32 %v2610_v61, %v1320_v52 }
 0x1f9   : > { %v1498_v27 = vsel %vm1434_vm9, %v1326_v17, %v1466_v19  ;;  %vm1435_vm11 = vcmp.gt.f32.partialorder %v1329_v20, 0.0  ;;  %v1467_v29 = vmul.f32 0.2, %v1329_v20 }
 0x1fa   : > { %v1924_v8 = vpack.c.bf16 %v1498_v27, %v1498_v27  ;;  %v1496_v31 = vsel %vm1432_vm10, %v1318_v44, %v1464_v21  ;;  %vm1433_vm12 = vcmp.gt.f32.partialorder %v1321_v24, 0.0  ;;  %v1465_v33 = vmul.f32 0.2, %v1321_v24 }
 0x1fb   : > { %v1922_v60 = vpack.c.bf16 %v1496_v31, %v1496_v31  ;;  %v1499_v34 = vsel %vm1435_vm11, %v1329_v20, %v1467_v29 }
 0x1fc   : > { %1659 = vst.msk [vmem:[%s2620_s29 + $0x18] sm:$0xf] %vm1652_vm4, %v1924_v8  ;;  %v1925_v35 = vpack.c.bf16 %v1499_v34, %v1499_v34  ;;  %v1497_v39 = vsel %vm1433_vm12, %v1321_v24, %v1465_v33 }
 0x1fd   : > { %1657 = vst.msk [vmem:[%s2620_s29 + $0x10] sm:$0xf] %vm1652_vm4, %v1922_v60  ;;  %v1923_v36 = vpack.c.bf16 %v1497_v39, %v1497_v39 }
 0x1fe   : > { %1660 = vst.msk [vmem:[%s2620_s29 + $0x1c] sm:$0xf] %vm1652_vm4, %v1925_v35 }
 0x1ff   : > { %1658 = vst.msk [vmem:[%s2620_s29 + $0x14] sm:$0xf] %vm1652_vm4, %v1923_v36 }
 0x204   : > { %v2145_v2 = vpop.f32.mrb[40].mxu1 }
 0x205   : > { %v1342_v13 = vadd.f32 %v2145_v2, %v2610_v61  ;;  %v1333_v48 = vpop.f32.mrb[41].mxu1 }
 0x206   : > { %v1334_v45 = vadd.f32 %v2610_v61, %v1333_v48  ;;  %v2146_v37 = vpop.f32.mrb[42].mxu1 }
 0x207   : > { %vm1438_vm13 = vcmp.gt.f32.partialorder %v1342_v13, 0.0  ;;  %v1470_v38 = vmul.f32 0.2, %v1342_v13  ;;  %v1345_v40 = vadd.f32 %v2146_v37, %v2610_v61  ;;  %v1336_v51 = vpop.f32.mrb[43].mxu1 }
 0x208   : > { %vm1436_vm14 = vcmp.gt.f32.partialorder %v1334_v45, 0.0  ;;  %v1468_v42 = vmul.f32 0.2, %v1334_v45  ;;  %v1337_v43 = vadd.f32 %v2610_v61, %v1336_v51 }
 0x209   : > { %v1502_v46 = vsel %vm1438_vm13, %v1342_v13, %v1470_v38  ;;  %vm1439_vm15 = vcmp.gt.f32.partialorder %v1345_v40, 0.0  ;;  %v1471_v49 = vmul.f32 0.2, %v1345_v40 }
 0x20a   : > { %v1928_v23 = vpack.c.bf16 %v1502_v46, %v1502_v46  ;;  %v1500_v3 = vsel %vm1436_vm14, %v1334_v45, %v1468_v42  ;;  %vm1437_vm0 = vcmp.gt.f32.partialorder %v1337_v43, 0.0  ;;  %v1469_v50 = vmul.f32 0.2, %v1337_v43 }
 0x20b   : > { %v1926_v26 = vpack.c.bf16 %v1500_v3, %v1500_v3  ;;  %v1503_v53 = vsel %vm1439_vm15, %v1345_v40, %v1471_v49 }
 0x20c   : > { %1663 = vst.msk [vmem:[%s2620_s29 + $0x28] sm:$0xf] %vm1652_vm4, %v1928_v23  ;;  %v1929_v10 = vpack.c.bf16 %v1503_v53, %v1503_v53  ;;  %v1501_v30 = vsel %vm1437_vm0, %v1337_v43, %v1469_v50 }
 0x20d   : > { %1661 = vst.msk [vmem:[%s2620_s29 + $0x20] sm:$0xf] %vm1652_vm4, %v1926_v26  ;;  %v1927_v54 = vpack.c.bf16 %v1501_v30, %v1501_v30 }
 0x20e   : > { %1664 = vst.msk [vmem:[%s2620_s29 + $0x2c] sm:$0xf] %vm1652_vm4, %v1929_v10 }
 0x20f   : > { %1662 = vst.msk [vmem:[%s2620_s29 + $0x24] sm:$0xf] %vm1652_vm4, %v1927_v54 }
 0x214   : > { %v2149_v55 = vpop.f32.mrb[44].mxu1 }
 0x215   : > { %v1358_v56 = vadd.f32 %v2149_v55, %v2610_v61  ;;  %v1349_v41 = vpop.f32.mrb[45].mxu1 }
 0x216   : > { %v1350_v57 = vadd.f32 %v2610_v61, %v1349_v41  ;;  %v2150_v12 = vpop.f32.mrb[46].mxu1 }
 0x217   : > { %vm1442_vm1 = vcmp.gt.f32.partialorder %v1358_v56, 0.0  ;;  %v1474_v32 = vmul.f32 0.2, %v1358_v56  ;;  %v1361_v5 = vadd.f32 %v2150_v12, %v2610_v61  ;;  %v1352_v58 = vpop.f32.mrb[47].mxu1 }
 0x218   : > { %vm1440_vm2 = vcmp.gt.f32.partialorder %v1350_v57, 0.0  ;;  %v1472_v47 = vmul.f32 0.2, %v1350_v57  ;;  %v1353_v59 = vadd.f32 %v2610_v61, %v1352_v58 }
 0x219   : > { %v1506_v62 = vsel %vm1442_vm1, %v1358_v56, %v1474_v32  ;;  %vm1443_vm3 = vcmp.gt.f32.partialorder %v1361_v5, 0.0  ;;  %v1475_v18 = vmul.f32 0.2, %v1361_v5 }
 0x21a   : > { %v1932_v63 = vpack.c.bf16 %v1506_v62, %v1506_v62  ;;  %v1504_v1 = vsel %vm1440_vm2, %v1350_v57, %v1472_v47  ;;  %vm1441_vm5 = vcmp.gt.f32.partialorder %v1353_v59, 0.0  ;;  %v1473_v4 = vmul.f32 0.2, %v1353_v59 }
 0x21b   : > { %v1930_v25 = vpack.c.bf16 %v1504_v1, %v1504_v1  ;;  %v1507_v7 = vsel %vm1443_vm3, %v1361_v5, %v1475_v18 }
 0x21c   : > { %1667 = vst.msk [vmem:[%s2620_s29 + $0x38] sm:$0xf] %vm1652_vm4, %v1932_v63  ;;  %v1933_v9 = vpack.c.bf16 %v1507_v7, %v1507_v7  ;;  %v1505_v22 = vsel %vm1441_vm5, %v1353_v59, %v1473_v4 }
 0x21d   : > { %1665 = vst.msk [vmem:[%s2620_s29 + $0x30] sm:$0xf] %vm1652_vm4, %v1930_v25  ;;  %v1931_v11 = vpack.c.bf16 %v1505_v22, %v1505_v22 }
 0x21e   : > { %1668 = vst.msk [vmem:[%s2620_s29 + $0x3c] sm:$0xf] %vm1652_vm4, %v1933_v9 }
 0x21f   : > { %1666 = vst.msk [vmem:[%s2620_s29 + $0x34] sm:$0xf] %vm1652_vm4, %v1931_v11 }
 0x224   : > { %v2153_v14 = vpop.f32.mrb[48].mxu1 }
 0x225   : > { %v1374_v0 = vadd.f32 %v2153_v14, %v2610_v61  ;;  %v1365_v15 = vpop.f32.mrb[49].mxu1 }
 0x226   : > { %v1366_v16 = vadd.f32 %v2610_v61, %v1365_v15  ;;  %v2154_v17 = vpop.f32.mrb[50].mxu1 }
 0x227   : > { %vm1446_vm6 = vcmp.gt.f32.partialorder %v1374_v0, 0.0  ;;  %v1478_v6 = vmul.f32 0.2, %v1374_v0  ;;  %v1377_v44 = vadd.f32 %v2154_v17, %v2610_v61  ;;  %v1368_v28 = vpop.f32.mrb[51].mxu1 }
 0x228   : > { %vm1444_vm7 = vcmp.gt.f32.partialorder %v1366_v16, 0.0  ;;  %v1476_v19 = vmul.f32 0.2, %v1366_v16  ;;  %v1369_v20 = vadd.f32 %v2610_v61, %v1368_v28 }
 0x229   : > { %v1510_v52 = vsel %vm1446_vm6, %v1374_v0, %v1478_v6  ;;  %vm1447_vm8 = vcmp.gt.f32.partialorder %v1377_v44, 0.0  ;;  %v1479_v21 = vmul.f32 0.2, %v1377_v44 }
 0x22a   : > { %v1936_v24 = vpack.c.bf16 %v1510_v52, %v1510_v52  ;;  %v1508_v27 = vsel %vm1444_vm7, %v1366_v16, %v1476_v19  ;;  %vm1445_vm9 = vcmp.gt.f32.partialorder %v1369_v20, 0.0  ;;  %v1477_v29 = vmul.f32 0.2, %v1369_v20 }
 0x22b   : > { %v1934_v8 = vpack.c.bf16 %v1508_v27, %v1508_v27  ;;  %v1511_v31 = vsel %vm1447_vm8, %v1377_v44, %v1479_v21 }
 0x22c   : > { %1671 = vst.msk [vmem:[%s2620_s29 + $0x48] sm:$0xf] %vm1652_vm4, %v1936_v24  ;;  %v1937_v33 = vpack.c.bf16 %v1511_v31, %v1511_v31  ;;  %v1509_v60 = vsel %vm1445_vm9, %v1369_v20, %v1477_v29 }
 0x22d   : > { %1669 = vst.msk [vmem:[%s2620_s29 + $0x40] sm:$0xf] %vm1652_vm4, %v1934_v8  ;;  %v1935_v34 = vpack.c.bf16 %v1509_v60, %v1509_v60 }
 0x22e   : > { %1672 = vst.msk [vmem:[%s2620_s29 + $0x4c] sm:$0xf] %vm1652_vm4, %v1937_v33 }
 0x22f   : > { %1670 = vst.msk [vmem:[%s2620_s29 + $0x44] sm:$0xf] %vm1652_vm4, %v1935_v34 }
 0x234   : > { %v2157_v35 = vpop.f32.mrb[52].mxu1 }
 0x235   : > { %v1390_v39 = vadd.f32 %v2157_v35, %v2610_v61  ;;  %v1381_v36 = vpop.f32.mrb[53].mxu1 }
 0x236   : > { %v1382_v2 = vadd.f32 %v2610_v61, %v1381_v36  ;;  %v2158_v13 = vpop.f32.mrb[54].mxu1 }
 0x237   : > { %vm1450_vm10 = vcmp.gt.f32.partialorder %v1390_v39, 0.0  ;;  %v1482_v48 = vmul.f32 0.2, %v1390_v39  ;;  %v1393_v45 = vadd.f32 %v2158_v13, %v2610_v61  ;;  %v1384_v37 = vpop.f32.mrb[55].mxu1 }
 0x238   : > { %vm1448_vm11 = vcmp.gt.f32.partialorder %v1382_v2, 0.0  ;;  %v1480_v38 = vmul.f32 0.2, %v1382_v2  ;;  %v1385_v40 = vadd.f32 %v2610_v61, %v1384_v37 }
 0x239   : > { %v1514_v51 = vsel %vm1450_vm10, %v1390_v39, %v1482_v48  ;;  %vm1451_vm12 = vcmp.gt.f32.partialorder %v1393_v45, 0.0  ;;  %v1483_v42 = vmul.f32 0.2, %v1393_v45 }
 0x23a   : > { %v1940_v43 = vpack.c.bf16 %v1514_v51, %v1514_v51  ;;  %v1512_v46 = vsel %vm1448_vm11, %v1382_v2, %v1480_v38  ;;  %vm1449_vm13 = vcmp.gt.f32.partialorder %v1385_v40, 0.0  ;;  %v1481_v49 = vmul.f32 0.2, %v1385_v40 }
 0x23b   : > { %v1938_v23 = vpack.c.bf16 %v1512_v46, %v1512_v46  ;;  %v1515_v3 = vsel %vm1451_vm12, %v1393_v45, %v1483_v42 }
 0x23c   : > { %1675 = vst.msk [vmem:[%s2620_s29 + $0x58] sm:$0xf] %vm1652_vm4, %v1940_v43  ;;  %v1941_v50 = vpack.c.bf16 %v1515_v3, %v1515_v3  ;;  %v1513_v26 = vsel %vm1449_vm13, %v1385_v40, %v1481_v49 }
 0x23d   : > { %1673 = vst.msk [vmem:[%s2620_s29 + $0x50] sm:$0xf] %vm1652_vm4, %v1938_v23  ;;  %v1939_v53 = vpack.c.bf16 %v1513_v26, %v1513_v26 }
 0x23e   : > { %1676 = vst.msk [vmem:[%s2620_s29 + $0x5c] sm:$0xf] %vm1652_vm4, %v1941_v50 }
 0x23f   : > { %1674 = vst.msk [vmem:[%s2620_s29 + $0x54] sm:$0xf] %vm1652_vm4, %v1939_v53 }
 0x244   : > { %v2161_v10 = vpop.f32.mrb[56].mxu1 }
 0x245   : > { %v1406_v30 = vadd.f32 %v2161_v10, %v2610_v61  ;;  %v1397_v54 = vpop.f32.mrb[57].mxu1 }
 0x246   : > { %v1398_v55 = vadd.f32 %v2610_v61, %v1397_v54  ;;  %v2162_v56 = vpop.f32.mrb[58].mxu1 }
 0x247   : > { %vm1454_vm14 = vcmp.gt.f32.partialorder %v1406_v30, 0.0  ;;  %v1486_v41 = vmul.f32 0.2, %v1406_v30  ;;  %v1409_v57 = vadd.f32 %v2162_v56, %v2610_v61  ;;  %v1400_v12 = vpop.f32.mrb[59].mxu1 }
 0x248   : > { %vm1452_vm15 = vcmp.gt.f32.partialorder %v1398_v55, 0.0  ;;  %v1484_v32 = vmul.f32 0.2, %v1398_v55  ;;  %v1401_v5 = vadd.f32 %v2610_v61, %v1400_v12 }
 0x249   : > { %v1518_v58 = vsel %vm1454_vm14, %v1406_v30, %v1486_v41  ;;  %vm1455_vm0 = vcmp.gt.f32.partialorder %v1409_v57, 0.0  ;;  %v1487_v47 = vmul.f32 0.2, %v1409_v57 }
 0x24a   : > { %v1944_v59 = vpack.c.bf16 %v1518_v58, %v1518_v58  ;;  %v1516_v62 = vsel %vm1452_vm15, %v1398_v55, %v1484_v32  ;;  %vm1453_vm1 = vcmp.gt.f32.partialorder %v1401_v5, 0.0  ;;  %v1485_v18 = vmul.f32 0.2, %v1401_v5 }
 0x24b   : > { %v1942_v63 = vpack.c.bf16 %v1516_v62, %v1516_v62  ;;  %v1519_v1 = vsel %vm1455_vm0, %v1409_v57, %v1487_v47 }
 0x24c   : > { %1679 = vst.msk [vmem:[%s2620_s29 + $0x68] sm:$0xf] %vm1652_vm4, %v1944_v59  ;;  %v1945_v4 = vpack.c.bf16 %v1519_v1, %v1519_v1  ;;  %v1517_v25 = vsel %vm1453_vm1, %v1401_v5, %v1485_v18 }
 0x24d   : > { %1677 = vst.msk [vmem:[%s2620_s29 + $0x60] sm:$0xf] %vm1652_vm4, %v1942_v63  ;;  %v1943_v7 = vpack.c.bf16 %v1517_v25, %v1517_v25 }
 0x24e   : > { %1680 = vst.msk [vmem:[%s2620_s29 + $0x6c] sm:$0xf] %vm1652_vm4, %v1945_v4 }
 0x24f   : > { %1678 = vst.msk [vmem:[%s2620_s29 + $0x64] sm:$0xf] %vm1652_vm4, %v1943_v7 }
 0x254   : > { %v2165_v9 = vpop.f32.mrb[60].mxu1 }
 0x255   : > { %v1422_v22 = vadd.f32 %v2165_v9, %v2610_v61  ;;  %v1413_v11 = vpop.f32.mrb[61].mxu1 }
 0x256   : > { %v1414_v14 = vadd.f32 %v2610_v61, %v1413_v11  ;;  %v2166_v0 = vpop.f32.mrb[62].mxu1 }
 0x257   : > { %vm1458_vm2 = vcmp.gt.f32.partialorder %v1422_v22, 0.0  ;;  %v1490_v15 = vmul.f32 0.2, %v1422_v22  ;;  %v1425_v16 = vadd.f32 %v2166_v0, %v2610_v61  ;;  %v1416_v17 = vpop.f32.mrb[63].mxu1 }
 0x258   : > { %vm1456_vm3 = vcmp.gt.f32.partialorder %v1414_v14, 0.0  ;;  %v1488_v6 = vmul.f32 0.2, %v1414_v14  ;;  %v1417_v44 = vadd.f32 %v2610_v61, %v1416_v17 }
 0x259   : > { %v1522_v28 = vsel %vm1458_vm2, %v1422_v22, %v1490_v15  ;;  %vm1459_vm5 = vcmp.gt.f32.partialorder %v1425_v16, 0.0  ;;  %v1491_v19 = vmul.f32 0.2, %v1425_v16 }
 0x25a   : > { %v1948_v20 = vpack.c.bf16 %v1522_v28, %v1522_v28  ;;  %v1520_v52 = vsel %vm1456_vm3, %v1414_v14, %v1488_v6  ;;  %vm1457_vm6 = vcmp.gt.f32.partialorder %v1417_v44, 0.0  ;;  %v1489_v21 = vmul.f32 0.2, %v1417_v44 }
 0x25b   : > { %v1946_v24 = vpack.c.bf16 %v1520_v52, %v1520_v52  ;;  %v1523_v27 = vsel %vm1459_vm5, %v1425_v16, %v1491_v19 }
 0x25c   : > { %1683 = vst.msk [vmem:[%s2620_s29 + $0x78] sm:$0xf] %vm1652_vm4, %v1948_v20  ;;  %v1949_v29 = vpack.c.bf16 %v1523_v27, %v1523_v27  ;;  %v1521_v8 = vsel %vm1457_vm6, %v1417_v44, %v1489_v21 }
 0x25d   : > { %1681 = vst.msk [vmem:[%s2620_s29 + $0x70] sm:$0xf] %vm1652_vm4, %v1946_v24  ;;  %v1947_v31 = vpack.c.bf16 %v1521_v8, %v1521_v8 }
 0x25e   : > { %1684 = vst.msk [vmem:[%s2620_s29 + $0x7c] sm:$0xf] %vm1652_vm4, %v1949_v29 }
 0x25f   : > { %1682 = vst.msk [vmem:[%s2620_s29 + $0x74] sm:$0xf] %vm1652_vm4, %v1947_v31 }
 0x260 PF: > { %s15_s20 = sadd.s32 1, %s2297_s20   ;;  %s2729_s18 = smov %s2293_s19 }
 0x261   : > { %p12_p5 = scmp.ge.s32.totalorder %s15_s20, 4   ;;  %s2730_s19 = smov %s2732_s21 }
 0x263   :  { %14 = sbr.rel (!%p12_p5) target bundleno = 2 (0x2), region = 70 }

</bundles_post_ra>
